<compile_context>
chip_gen: v6e
topology: v6e:2x2x1
jax: 0.10.0
libtpu: 0.0.40
codegen_flags: <defaults>
</compile_context>

<pallas_src>
import functools

import jax
import jax.numpy as jnp
from jax.experimental import pallas as pl
from jax.experimental.pallas import tpu as pltpu


def _round_up(x, m):
    return (x + m - 1) // m * m


# ---------------------------------------------------------------------------
# Row kernel (fc path / big-channel conv path):
#   out = (sigmoid(ctx @ W1 + b1) * x) @ W2 + b2     on [TN, feat] lane-dense tiles
# ---------------------------------------------------------------------------
def _glu_rows_kernel(x_ref, ctx_ref, w1_ref, b1_ref, w2_ref, b2_ref, o_ref, *, approx):
    mm_dtype = w1_ref.dtype
    gate_lin = (
        jnp.dot(ctx_ref[...].astype(mm_dtype), w1_ref[...],
                preferred_element_type=jnp.float32)
        + b1_ref[...]
    )
    # sigmoid = 1 / (1 + exp(-z)); exp and reciprocal both issue on the EUP slot.
    gate = pl.reciprocal(1.0 + jnp.exp(-gate_lin), approx=approx)
    x_gated = gate * x_ref[...].astype(jnp.float32)          # gating stays in f32
    out = (
        jnp.dot(x_gated.astype(mm_dtype), w2_ref[...],
                preferred_element_type=jnp.float32)
        + b2_ref[...]
    )
    o_ref[...] = out.astype(o_ref.dtype)


def _glu_rows(x2d, ctx2d, w1, b1, w2, b2, *, matmul_dtype=None, row_tile=512):
    """Fused GLU on row-major [N, feat] inputs, row-tiled + lane-padded."""
    n, in_dim = x2d.shape
    ctx_dim = ctx2d.shape[1]
    out_dim = w2.shape[1]
    out_dtype = x2d.dtype
    mm_dtype = jnp.dtype(matmul_dtype) if matmul_dtype is not None else jnp.dtype(out_dtype)

    # Lane-dense feature dims (multiples of 128); row tile multiple of 8 sublanes.
    in_p = _round_up(in_dim, 128)
    ctx_p = _round_up(ctx_dim, 128)
    out_p = _round_up(out_dim, 128)
    tn = row_tile if n >= row_tile else _round_up(n, 8)
    n_p = _round_up(n, tn)

    # Zero-pad activations / weights / biases.  Padded W1 cols & W2 rows are zero,
    # x padded lanes are zero, so padding lanes never contaminate real outputs.
    xp = jnp.zeros((n_p, in_p), out_dtype).at[:n, :in_dim].set(x2d)
    cp = jnp.zeros((n_p, ctx_p), out_dtype).at[:n, :ctx_dim].set(ctx2d)
    w1p = jnp.zeros((ctx_p, in_p), mm_dtype).at[:ctx_dim, :in_dim].set(w1.astype(mm_dtype))
    w2p = jnp.zeros((in_p, out_p), mm_dtype).at[:in_dim, :out_dim].set(w2.astype(mm_dtype))
    b1p = jnp.zeros((1, in_p), jnp.float32).at[0, :in_dim].set(b1.astype(jnp.float32))
    b2p = jnp.zeros((1, out_p), jnp.float32).at[0, :out_dim].set(b2.astype(jnp.float32))

    approx = mm_dtype == jnp.bfloat16
    flops = 2 * n_p * (ctx_p * in_p + in_p * out_p) + 3 * n_p * in_p
    bytes_accessed = (
        xp.size * xp.dtype.itemsize + cp.size * cp.dtype.itemsize
        + w1p.size * w1p.dtype.itemsize + w2p.size * w2p.dtype.itemsize
        + (b1p.size + b2p.size) * 4
        + n_p * out_p * jnp.dtype(out_dtype).itemsize
    )

    out = pl.pallas_call(
        functools.partial(_glu_rows_kernel, approx=approx),
        out_shape=jax.ShapeDtypeStruct((n_p, out_p), out_dtype),
        grid=(n_p // tn,),
        in_specs=[
            pl.BlockSpec((tn, in_p), lambda i: (i, 0)),     # x rows (pipelined)
            pl.BlockSpec((tn, ctx_p), lambda i: (i, 0)),    # ctx rows (pipelined)
            pl.BlockSpec((ctx_p, in_p), lambda i: (0, 0)),  # W1 resident
            pl.BlockSpec((1, in_p), lambda i: (0, 0)),      # b1 resident
            pl.BlockSpec((in_p, out_p), lambda i: (0, 0)),  # W2 resident
            pl.BlockSpec((1, out_p), lambda i: (0, 0)),     # b2 resident
        ],
        out_specs=pl.BlockSpec((tn, out_p), lambda i: (i, 0)),
        compiler_params=pltpu.CompilerParams(
            dimension_semantics=("parallel",),              # megacore on v7x
            vmem_limit_bytes=32 * 1024 * 1024,              # v7x-safe (64 MiB phys)
        ),
        cost_estimate=pl.CostEstimate(
            flops=flops, transcendentals=n_p * in_p, bytes_accessed=bytes_accessed
        ),
    )(xp, cp, w1p, b1p, w2p, b2p)
    return out[:n, :out_dim]


# ---------------------------------------------------------------------------
# Tiny-channel conv2d kernel (VPU formulation): spatial H*W on the lane axis,
# 1x1 convs as unrolled scalar-weight multiply-adds.  No MXU, no NCHW<->NHWC.
# ---------------------------------------------------------------------------
def _glu_conv_kernel(x_ref, ctx_ref, w1_ref, b1_ref, w2_ref, b2_ref, o_ref,
                     *, c_in, c_ctx, c_out):
    ts = x_ref.shape[-1]
    x = x_ref[...].astype(jnp.float32)       # [c_in,  ts]
    ctx = ctx_ref[...].astype(jnp.float32)   # [c_ctx, ts]
    gated = []
    for ci in range(c_in):
        acc = jnp.full((1, ts), b1_ref[ci], jnp.float32)
        for cj in range(c_ctx):
            acc = acc + w1_ref[cj, ci] * ctx[cj:cj + 1, :]
        gate = pl.reciprocal(1.0 + jnp.exp(-acc), approx=False)
        gated.append(gate * x[ci:ci + 1, :])
    outs = []
    for co in range(c_out):
        acc = jnp.full((1, ts), b2_ref[co], jnp.float32)
        for ci in range(c_in):
            acc = acc + w2_ref[ci, co] * gated[ci]
        outs.append(acc)
    o_ref[...] = jnp.concatenate(outs, axis=0).astype(o_ref.dtype)


def _glu_conv_small(x, context, w1, b1, w2, b2):
    b, c_in, h, w = x.shape
    c_ctx = context.shape[1]
    c_out = w2.shape[1]
    hw = h * w
    hw_p = _round_up(hw, 128)
    ts = next(t for t in (2048, 1024, 512, 256, 128) if hw_p % t == 0)

    x3 = x.reshape(b, c_in, hw)
    c3 = context.reshape(b, c_ctx, hw)
    if hw_p != hw:
        x3 = jnp.pad(x3, ((0, 0), (0, 0), (0, hw_p - hw)))
        c3 = jnp.pad(c3, ((0, 0), (0, 0), (0, hw_p - hw)))

    smem = pl.BlockSpec(memory_space=pltpu.MemorySpace.SMEM)
    flops = 2 * b * hw_p * (c_ctx * c_in + c_in * c_out + c_in)
    bytes_accessed = (x3.size + c3.size + b * c_out * hw_p) * x.dtype.itemsize

    out = pl.pallas_call(
        functools.partial(_glu_conv_kernel, c_in=c_in, c_ctx=c_ctx, c_out=c_out),
        out_shape=jax.ShapeDtypeStruct((b, c_out, hw_p), x.dtype),
        grid=(b, hw_p // ts),
        in_specs=[
            pl.BlockSpec((None, c_in, ts), lambda bi, si: (bi, 0, si)),
            pl.BlockSpec((None, c_ctx, ts), lambda bi, si: (bi, 0, si)),
            smem, smem, smem, smem,                        # W1, b1, W2, b2 scalars
        ],
        out_specs=pl.BlockSpec((None, c_out, ts), lambda bi, si: (bi, 0, si)),
        compiler_params=pltpu.CompilerParams(
            dimension_semantics=("parallel", "parallel"),
            vmem_limit_bytes=32 * 1024 * 1024,
        ),
        cost_estimate=pl.CostEstimate(
            flops=flops, transcendentals=b * hw_p * c_in, bytes_accessed=bytes_accessed
        ),
    )(x3, c3, w1.astype(jnp.float32), b1.astype(jnp.float32),
      w2.astype(jnp.float32), b2.astype(jnp.float32))
    return out[:, :, :hw].reshape(b, c_out, h, w)


# ---------------------------------------------------------------------------
# Public API
# ---------------------------------------------------------------------------
def init_glu_params(key, input_dim, output_dim, context_dim, dtype=jnp.float32):
    """Deterministic kaiming-normal-ish init; biases zero (synthetic, not a checkpoint)."""
    k1, k2 = jax.random.split(key)
    w1 = jax.random.normal(k1, (context_dim, input_dim), dtype) * jnp.sqrt(
        2.0 / context_dim
    ).astype(dtype)
    b1 = jnp.zeros((input_dim,), dtype)
    w2 = jax.random.normal(k2, (input_dim, output_dim), dtype) * jnp.sqrt(
        2.0 / input_dim
    ).astype(dtype)
    b2 = jnp.zeros((output_dim,), dtype)
    return w1, b1, w2, b2


def glu_forward(x, context, params, input_type="fc", matmul_dtype=None):
    """Pallas GLU forward.

    input_type='fc':     x [B, input_dim],        context [B, context_dim]
    input_type='conv2d': x [B, input_dim, H, W],  context [B, context_dim, H, W] (NCHW)
    matmul_dtype: optional lower-precision operand dtype for the MXU matmuls
                  (e.g. jnp.bfloat16 on v6e/v7x); accumulation/gating stay f32.
    """
    assert input_type in ("fc", "conv2d")
    w1, b1, w2, b2 = params
    if input_type == "fc":
        return _glu_rows(x, context, w1, b1, w2, b2, matmul_dtype=matmul_dtype)

    c_in = x.shape[1]
    c_ctx = context.shape[1]
    c_out = w2.shape[1]
    if max(c_in, c_ctx, c_out) <= 32:
        # Tiny channel counts: VPU streaming kernel, spatial on the lane axis.
        return _glu_conv_small(x, context, w1, b1, w2, b2)

    # Larger channels: 1x1 conv == per-pixel matmul over channels; reuse the
    # lane-dense, row-tiled MXU kernel on NHWC rows.
    b, _, h, w = x.shape
    x_rows = jnp.transpose(x, (0, 2, 3, 1)).reshape(b * h * w, c_in)
    ctx_rows = jnp.transpose(context, (0, 2, 3, 1)).reshape(b * h * w, c_ctx)
    out_rows = _glu_rows(x_rows, ctx_rows, w1, b1, w2, b2, matmul_dtype=matmul_dtype)
    return jnp.transpose(out_rows.reshape(b, h, w, c_out), (0, 3, 1, 2))


def _glu_reference(x, context, params, input_type="fc"):
    """Pure-JAX reference matching PyTorch GLU semantics."""
    w1, b1, w2, b2 = params
    if input_type == "fc":
        gate = jax.nn.sigmoid(context @ w1 + b1)
        return (gate * x) @ w2 + b2
    gate = jax.nn.sigmoid(
        jnp.einsum("bchw,cd->bdhw", context, w1) + b1[None, :, None, None]
    )
    xg = gate * x
    return jnp.einsum("bchw,cd->bdhw", xg, w2) + b2[None, :, None, None]


if __name__ == "__main__":
    key = jax.random.PRNGKey(0)
    k_fc_x, k_fc_ctx, k_fc_p, k_cv_x, k_cv_ctx, k_cv_p = jax.random.split(key, 6)

    # --- fc variant: input_dim=32, output_dim=32, context_dim=16, batch=8 ---
    B, IN_DIM, OUT_DIM, CTX_DIM = 8, 32, 32, 16
    x_fc = jax.random.normal(k_fc_x, (B, IN_DIM), jnp.float32)
    ctx_fc = jax.random.normal(k_fc_ctx, (B, CTX_DIM), jnp.float32)
    params_fc = init_glu_params(k_fc_p, IN_DIM, OUT_DIM, CTX_DIM)

    out_fc = jax.block_until_ready(glu_forward(x_fc, ctx_fc, params_fc, "fc"))
    ref_fc = _glu_reference(x_fc, ctx_fc, params_fc, "fc")
    assert out_fc.shape == (B, OUT_DIM)
    assert jnp.allclose(out_fc, ref_fc, atol=1e-5, rtol=1e-5)

    # fc variant with bf16 matmul operands (f32 accumulation) — looser tolerance.
    out_fc_bf16 = jax.block_until_ready(
        glu_forward(x_fc, ctx_fc, params_fc, "fc", matmul_dtype=jnp.bfloat16)
    )
    assert jnp.allclose(out_fc_bf16, ref_fc, atol=5e-2, rtol=5e-2)

    # --- conv2d variant: NCHW, input_dim=4, output_dim=8, context_dim=3, 16x16 ---
    Bc, C_IN, C_OUT, C_CTX, H, W = 2, 4, 8, 3, 16, 16
    x_cv = jax.random.normal(k_cv_x, (Bc, C_IN, H, W), jnp.float32)
    ctx_cv = jax.random.normal(k_cv_ctx, (Bc, C_CTX, H, W), jnp.float32)
    params_cv = init_glu_params(k_cv_p, C_IN, C_OUT, C_CTX)

    out_cv = jax.block_until_ready(glu_forward(x_cv, ctx_cv, params_cv, "conv2d"))
    ref_cv = _glu_reference(x_cv, ctx_cv, params_cv, "conv2d")
    assert out_cv.shape == (Bc, C_OUT, H, W)
    assert jnp.allclose(out_cv, ref_cv, atol=1e-5, rtol=1e-5)

    print("KERNEL_OK")
</pallas_src>

<mosaic_0001>
module attributes {stable_mosaic.version = 11 : i64} {
  func.func @_glu_rows_kernel(%arg0: i32, %arg1: memref<8x128xf32, #tpu.memory_space<vmem>>, %arg2: memref<8x128xf32, #tpu.memory_space<vmem>>, %arg3: memref<128x128xf32, #tpu.memory_space<vmem>>, %arg4: memref<1x128xf32, #tpu.memory_space<vmem>>, %arg5: memref<128x128xf32, #tpu.memory_space<vmem>>, %arg6: memref<1x128xf32, #tpu.memory_space<vmem>>, %arg7: memref<8x128xf32, #tpu.memory_space<vmem>>) attributes {dimension_semantics = [#tpu.dimension_semantics<parallel>], iteration_bounds = array<i64: 1>, scalar_prefetch = 0 : i64, scratch_operands = 0 : i64, tpu.core_type = #tpu.core_type<tc>, window_params = [{transform_indices = @transform_0, window_bounds = array<i64: 8, 128>}, {transform_indices = @transform_1, window_bounds = array<i64: 8, 128>}, {pipeline_mode = #tpu.pipeline_mode<synchronous>, transform_indices = @transform_2, window_bounds = array<i64: 128, 128>}, {pipeline_mode = #tpu.pipeline_mode<synchronous>, transform_indices = @transform_3, window_bounds = array<i64: 1, 128>}, {pipeline_mode = #tpu.pipeline_mode<synchronous>, transform_indices = @transform_4, window_bounds = array<i64: 128, 128>}, {pipeline_mode = #tpu.pipeline_mode<synchronous>, transform_indices = @transform_5, window_bounds = array<i64: 1, 128>}, {transform_indices = @transform_6, window_bounds = array<i64: 8, 128>}]} {
    %c0 = arith.constant 0 : index
    %c0_0 = arith.constant 0 : index
    %0 = vector.load %arg2[%c0, %c0_0] : memref<8x128xf32, #tpu.memory_space<vmem>>, vector<8x128xf32>
    %c0_1 = arith.constant 0 : index
    %c0_2 = arith.constant 0 : index
    %1 = vector.load %arg3[%c0_1, %c0_2] : memref<128x128xf32, #tpu.memory_space<vmem>>, vector<128x128xf32>
    %cst = arith.constant dense<0.000000e+00> : vector<8x128xf32>
    %2 = tpu.matmul %0, %1, %cst {dimension_numbers = #tpu.dot_dimension_numbers<[1], [0], [0], [1], [0, 0, 1, 1], [], []>} : vector<8x128xf32>, vector<128x128xf32>, vector<8x128xf32> -> vector<8x128xf32>
    %c0_3 = arith.constant 0 : index
    %c0_4 = arith.constant 0 : index
    %3 = vector.load %arg4[%c0_3, %c0_4] : memref<1x128xf32, #tpu.memory_space<vmem>>, vector<1x128xf32>
    %4 = vector.broadcast %3 : vector<1x128xf32> to vector<8x128xf32>
    %5 = arith.addf %2, %4 : vector<8x128xf32>
    %cst_5 = arith.constant 0.000000e+00 : f32
    %6 = vector.broadcast %cst_5 : f32 to vector<8x128xf32>
    %7 = arith.subf %6, %5 : vector<8x128xf32>
    %8 = math.exp %7 : vector<8x128xf32>
    %cst_6 = arith.constant 1.000000e+00 : f32
    %9 = vector.broadcast %cst_6 : f32 to vector<8x128xf32>
    %10 = arith.addf %9, %8 : vector<8x128xf32>
    %11 = tpu.reciprocal %10 : vector<8x128xf32> -> vector<8x128xf32>
    %c0_7 = arith.constant 0 : index
    %c0_8 = arith.constant 0 : index
    %12 = vector.load %arg1[%c0_7, %c0_8] : memref<8x128xf32, #tpu.memory_space<vmem>>, vector<8x128xf32>
    %13 = arith.mulf %11, %12 : vector<8x128xf32>
    %c0_9 = arith.constant 0 : index
    %c0_10 = arith.constant 0 : index
    %14 = vector.load %arg5[%c0_9, %c0_10] : memref<128x128xf32, #tpu.memory_space<vmem>>, vector<128x128xf32>
    %cst_11 = arith.constant dense<0.000000e+00> : vector<8x128xf32>
    %15 = tpu.matmul %13, %14, %cst_11 {dimension_numbers = #tpu.dot_dimension_numbers<[1], [0], [0], [1], [0, 0, 1, 1], [], []>} : vector<8x128xf32>, vector<128x128xf32>, vector<8x128xf32> -> vector<8x128xf32>
    %c0_12 = arith.constant 0 : index
    %c0_13 = arith.constant 0 : index
    %16 = vector.load %arg6[%c0_12, %c0_13] : memref<1x128xf32, #tpu.memory_space<vmem>>, vector<1x128xf32>
    %17 = vector.broadcast %16 : vector<1x128xf32> to vector<8x128xf32>
    %18 = arith.addf %15, %17 : vector<8x128xf32>
    %c0_14 = arith.constant 0 : index
    %c0_15 = arith.constant 0 : index
    %19 = vector.load %arg7[%c0_14, %c0_15] : memref<8x128xf32, #tpu.memory_space<vmem>>, vector<8x128xf32>
    tpu.vector_store %arg7[%c0_14, %c0_15], %18 {strides = array<i32>} : memref<8x128xf32, #tpu.memory_space<vmem>>, vector<8x128xf32>,
    return
  }
  func.func @transform_0(%arg0: i32) -> (i32, i32) {
    %c0_i32 = arith.constant 0 : i32
    %c0_i32_0 = arith.constant 0 : i32
    return %arg0, %c0_i32 : i32, i32
  }
  func.func @transform_1(%arg0: i32) -> (i32, i32) {
    %c0_i32 = arith.constant 0 : i32
    %c0_i32_0 = arith.constant 0 : i32
    return %arg0, %c0_i32 : i32, i32
  }
  func.func @transform_2(%arg0: i32) -> (i32, i32) {
    %c0_i32 = arith.constant 0 : i32
    %c0_i32_0 = arith.constant 0 : i32
    %c0_i32_1 = arith.constant 0 : i32
    return %c0_i32, %c0_i32_0 : i32, i32
  }
  func.func @transform_3(%arg0: i32) -> (i32, i32) {
    %c0_i32 = arith.constant 0 : i32
    %c0_i32_0 = arith.constant 0 : i32
    %c0_i32_1 = arith.constant 0 : i32
    return %c0_i32, %c0_i32_0 : i32, i32
  }
  func.func @transform_4(%arg0: i32) -> (i32, i32) {
    %c0_i32 = arith.constant 0 : i32
    %c0_i32_0 = arith.constant 0 : i32
    %c0_i32_1 = arith.constant 0 : i32
    return %c0_i32, %c0_i32_0 : i32, i32
  }
  func.func @transform_5(%arg0: i32) -> (i32, i32) {
    %c0_i32 = arith.constant 0 : i32
    %c0_i32_0 = arith.constant 0 : i32
    %c0_i32_1 = arith.constant 0 : i32
    return %c0_i32, %c0_i32_0 : i32, i32
  }
  func.func @transform_6(%arg0: i32) -> (i32, i32) {
    %c0_i32 = arith.constant 0 : i32
    %c0_i32_0 = arith.constant 0 : i32
    return %arg0, %c0_i32 : i32, i32
  }
}

</mosaic_0001>

<bundles_post_ra>
// kernel: tpu_custom_call.1
= control target key start
LH: loop header
LB: loop body
LE: loop exit
PB: predicated region body
PF: predicated region fallthrough
CT: control target
= control target key end

     0   :  { %11 = vsyncpa [#allocation3], 0  ;;  %s613_s0 = inlined_call_operand.hbm [shape: f32[8,128], index: 0, kind: input, shape index: {}]   ;;  %s614_s1 = inlined_call_operand.hbm [shape: f32[8,128], index: 1, kind: input, shape index: {}]   ;;  %s615_s2 = inlined_call_operand.hbm [shape: f32[128,128], index: 2, kind: input, shape index: {}]   ;;  %s616_s3 = inlined_call_operand.vmem [shape: f32[1,128], index: 3, kind: input, shape index: {}]   ;;  %s617_s4 = inlined_call_operand.hbm [shape: f32[128,128], index: 4, kind: input, shape index: {}]   ;;  %s618_s5 = inlined_call_operand.vmem [shape: f32[1,128], index: 5, kind: input, shape index: {}]   ;;  %s619_s6 = inlined_call_operand.hbm [shape: f32[8,128], index: 6, kind: output, shape index: {}]  }
   0x1   :  { %12 = vsyncpa [#allocation6], 0 }
   0x2   :  { %13 = vsyncpa [#allocation9], 0 }
   0x3   :  { %14 = vsyncpa [#allocation4], 0  ;;  %s514_s21 = smov [#allocation5]   ;;  %s515_s23 = smov [#allocation2]  }
   0x4   :  { %s31_s22 = sshll.u32 %s514_s21, 4  ;;  %s21_s24 = sshll.u32 %s515_s23, 4  ;;  %s32_s22 = int_to_ptr.vmem [resolvable:$true] %s31_s22  ;;  %s22_s24 = int_to_ptr.vmem [resolvable:$true] %s21_s24 }
   0x5   :  { %s414_s25 = scalar_lea.vmem %s32_s22, 128  ;;  %p419_p1 = scmp.lt.s32.totalorder %s32_s22, %s32_s22 }
   0x6   :  { %p415_p0 = scmp.ne.s32.totalorder %s32_s22, %s414_s25  ;;  %p420_p2 = scmp.lt.s32.totalorder %s414_s25, %s414_s25 }
   0x8   :  { %p421_p3 = por %p420_p2, %p419_p1 }
   0xa   :  { %p422_p4 = pnand %p421_p3, %p415_p0 }
   0xc   :  { %425 = shalt.err (!%p422_p4)
}
   0xd   :  { %34 = dma.hbm_to_vmem [thread:$0]  %s614_s1, 128, %s32_s22, [#allocation6]  }
   0xe   :  { %s434_s28 = scalar_lea.vmem %s22_s24, 128  ;;  %p439_p6 = scmp.lt.s32.totalorder %s22_s24, %s22_s24 }
   0xf   :  { %p435_p5 = scmp.ne.s32.totalorder %s22_s24, %s434_s28  ;;  %p440_p7 = scmp.lt.s32.totalorder %s434_s28, %s434_s28 }
  0x11   :  { %p441_p8 = por %p440_p7, %p439_p6 }
  0x13   :  { %p442_p9 = pnand %p441_p8, %p435_p5 }
  0x15   :  { %445 = shalt.err (!%p442_p9)
}
  0x16   :  { %24 = dma.hbm_to_vmem [thread:$0]  %s613_s0, 128, %s22_s24, [#allocation3]  }
  0x17   :  { %s516_s7 = smov [#allocation7]  }
  0x18   :  { %s40_s8 = sshll.u32 %s516_s7, 4  ;;  %s41_s8 = int_to_ptr.vmem [resolvable:$true] %s40_s8 }
  0x19   :  { %s454_s9 = scalar_lea.vmem %s41_s8, 2048  ;;  %p459_p11 = scmp.lt.s32.totalorder %s41_s8, %s41_s8 }
  0x1a   :  { %p455_p10 = scmp.ne.s32.totalorder %s41_s8, %s454_s9  ;;  %p460_p12 = scmp.lt.s32.totalorder %s454_s9, %s454_s9 }
  0x1c   :  { %p461_p13 = por %p460_p12, %p459_p11 }
  0x1e   :  { %p462_p0 = pnand %p461_p13, %p455_p10 }
  0x20   :  { %465 = shalt.err (!%p462_p0)
}
  0x21   :  { %s517_s1 = smov 128   ;;  %s518_s10 = smov 8  }
  0x22   :  { %46 = dma.hbm_to_vmem [thread:$0]  %s615_s2, 2048, %s41_s8, [#allocation6], %s517_s1, %s517_s1, %s518_s10  }
  0x23   :  { %s519_s13 = smov [#allocation8]  }
  0x24   :  { %s54_s14 = sshll.u32 %s519_s13, 4  ;;  %s55_s14 = int_to_ptr.vmem [resolvable:$true] %s54_s14 }
  0x25   :  { %s474_s0 = scalar_lea.vmem %s55_s14, 2048  ;;  %p479_p2 = scmp.lt.s32.totalorder %s55_s14, %s55_s14 }
  0x26   :  { %p475_p1 = scmp.ne.s32.totalorder %s55_s14, %s474_s0  ;;  %p480_p3 = scmp.lt.s32.totalorder %s474_s0, %s474_s0 }
  0x28   :  { %p481_p4 = por %p480_p3, %p479_p2 }
  0x2a   :  { %p482_p5 = pnand %p481_p4, %p475_p1 }
  0x2c   :  { %485 = shalt.err (!%p482_p5)
}
  0x2d   :  { %60 = dma.hbm_to_vmem [thread:$0]  %s617_s4, 2048, %s55_s14, [#allocation9], %s517_s1, %s517_s1, %s518_s10  }
  0x2e   :  { %506 = dma.done.wait [#allocation3], 128  }
  0x2f   :  { %507 = vsyncadd [#allocation3], 4294967168 }
  0x30   :  { %508 = dma.done.wait [#allocation6], 2176  }
  0x31   :  { %509 = vsyncadd [#allocation6], 4294965120 }
  0x32   :  { %510 = dma.done.wait [#allocation9], 2048  }
  0x33   :  { %511 = vsyncadd [#allocation9], 4294965248  ;;  %v520_v0 = vmov 0.0   ;;  %vm521_vm0 = vmmov 0   ;;  %v91_v1 = vld [vmem:[#allocation7 + $0x78] sm:$0xff]  ;;  %v90_v2 = vld [vmem:[#allocation7 + $0x70] sm:$0xff] }
  0x34   :  { %323 = vmatprep.subr.mxu0 %v520_v0  ;;  %355 = vmatprep.mubr.msk.f32.mxu0 %vm521_vm0, %v520_v0  ;;  %v89_v3 = vld [vmem:[#allocation7 + $0x68] sm:$0xff]  ;;  %v88_v4 = vld [vmem:[#allocation7 + $0x60] sm:$0xff]  ;;  %v87_v5 = vld [vmem:[#allocation7 + $0x58] sm:$0xff]  ;;  %s522_s19 = smov [#allocation10]  }
  0x35   :  { %358 = vmatprep.subr.mxu1 %v520_v0  ;;  %390 = vmatprep.mubr.msk.f32.mxu1 %vm521_vm0, %v520_v0  ;;  %v86_v6 = vld [vmem:[#allocation7 + $0x50] sm:$0xff]  ;;  %v85_v7 = vld [vmem:[#allocation7 + $0x48] sm:$0xff]  ;;  %v84_v8 = vld [vmem:[#allocation7 + $0x40] sm:$0xff]  ;;  %s276_s20 = sshll.u32 %s522_s19, 4  ;;  %s277_s20 = int_to_ptr.vmem [resolvable:$true] %s276_s20 }
  0x36   :  { %324 = vmatpush3.msra.mxu0 %v91_v1  ;;  %v83_v9 = vld [vmem:[#allocation7 + $0x38] sm:$0xff]  ;;  %v82_v10 = vld [vmem:[#allocation7 + $0x30] sm:$0xff]  ;;  %v81_v11 = vld [vmem:[#allocation7 + $0x28] sm:$0xff]  ;;  %p491_p7 = scmp.lt.s32.totalorder %s277_s20, %s277_s20 }
  0x37   :  { %325 = vmatprep.subr.mxu0 %v520_v0  ;;  %v80_v12 = vld [vmem:[#allocation7 + $0x20] sm:$0xff]  ;;  %v79_v13 = vld [vmem:[#allocation7 + $0x18] sm:$0xff]  ;;  %v78_v14 = vld [vmem:[#allocation7 + $0x10] sm:$0xff] }
  0x38   :  { %326 = vmatpush3.msra.mxu0 %v90_v2  ;;  %v77_v15 = vld [vmem:[#allocation7 + $0x8] sm:$0xff]  ;;  %v76_v16 = vld [vmem:[#allocation7] sm:$0xff]  ;;  %v75_v17 = vld [vmem:[#allocation5] sm:$0xff] }
  0x39   :  { %327 = vmatprep.subr.mxu0 %v520_v0  ;;  %v191_v18 = vld [vmem:[#allocation8 + $0x78] sm:$0xff]  ;;  %v190_v19 = vld [vmem:[#allocation8 + $0x70] sm:$0xff]  ;;  %v189_v20 = vld [vmem:[#allocation8 + $0x68] sm:$0xff] }
  0x3a   :  { %328 = vmatpush3.msra.mxu0 %v89_v3  ;;  %359 = vmatpush3.msra.mxu1 %v191_v18  ;;  %v188_v21 = vld [vmem:[#allocation8 + $0x60] sm:$0xff]  ;;  %v187_v22 = vld [vmem:[#allocation8 + $0x58] sm:$0xff]  ;;  %v186_v23 = vld [vmem:[#allocation8 + $0x50] sm:$0xff] }
  0x3b   :  { %329 = vmatprep.subr.mxu0 %v520_v0  ;;  %360 = vmatprep.subr.mxu1 %v520_v0  ;;  %v185_v24 = vld [vmem:[#allocation8 + $0x48] sm:$0xff]  ;;  %v184_v25 = vld [vmem:[#allocation8 + $0x40] sm:$0xff]  ;;  %v183_v26 = vld [vmem:[#allocation8 + $0x38] sm:$0xff] }
  0x3c   :  { %330 = vmatpush3.msra.mxu0 %v88_v4  ;;  %361 = vmatpush3.msra.mxu1 %v190_v19  ;;  %v182_v27 = vld [vmem:[#allocation8 + $0x30] sm:$0xff]  ;;  %v181_v28 = vld [vmem:[#allocation8 + $0x28] sm:$0xff]  ;;  %v180_v29 = vld [vmem:[#allocation8 + $0x20] sm:$0xff] }
  0x3d   :  { %331 = vmatprep.subr.mxu0 %v520_v0  ;;  %362 = vmatprep.subr.mxu1 %v520_v0  ;;  %v179_v30 = vld [vmem:[#allocation8 + $0x18] sm:$0xff]  ;;  %v178_v31 = vld [vmem:[#allocation8 + $0x10] sm:$0xff]  ;;  %v177_v32 = vld [vmem:[#allocation8 + $0x8] sm:$0xff] }
  0x3e   :  { %332 = vmatpush3.msra.mxu0 %v87_v5  ;;  %363 = vmatpush3.msra.mxu1 %v189_v20  ;;  %v176_v33 = vld [vmem:[#allocation8] sm:$0xff]  ;;  %v287_v34 = vld [vmem:[%s616_s3] ss:$0 sm:$0xff]  ;;  %s486_s3 = scalar_lea.vmem %s277_s20, 128 }
  0x3f   :  { %333 = vmatprep.subr.mxu0 %v520_v0  ;;  %364 = vmatprep.subr.mxu1 %v520_v0  ;;  %v174_v42 = vld [vmem:[#allocation2] sm:$0xff]  ;;  %p487_p6 = scmp.ne.s32.totalorder %s277_s20, %s486_s3  ;;  %p492_p8 = scmp.lt.s32.totalorder %s486_s3, %s486_s3 }
  0x40   :  { %334 = vmatpush3.msra.mxu0 %v86_v6  ;;  %365 = vmatpush3.msra.mxu1 %v188_v21  ;;  %v288_v45 = vld [vmem:[%s618_s5] ss:$0 sm:$0xff] }
  0x41   :  { %335 = vmatprep.subr.mxu0 %v520_v0  ;;  %366 = vmatprep.subr.mxu1 %v520_v0  ;;  %p493_p9 = por %p492_p8, %p491_p7 }
  0x42   :  { %336 = vmatpush3.msra.mxu0 %v85_v7  ;;  %367 = vmatpush3.msra.mxu1 %v187_v22 }
  0x43   :  { %337 = vmatprep.subr.mxu0 %v520_v0  ;;  %368 = vmatprep.subr.mxu1 %v520_v0  ;;  %p494_p10 = pnand %p493_p9, %p487_p6 }
  0x44   :  { %338 = vmatpush3.msra.mxu0 %v84_v8  ;;  %369 = vmatpush3.msra.mxu1 %v186_v23 }
  0x45   :  { %339 = vmatprep.subr.mxu0 %v520_v0  ;;  %370 = vmatprep.subr.mxu1 %v520_v0 }
  0x46   :  { %340 = vmatpush3.msra.mxu0 %v83_v9  ;;  %371 = vmatpush3.msra.mxu1 %v185_v24 }
  0x47   :  { %341 = vmatprep.subr.mxu0 %v520_v0  ;;  %372 = vmatprep.subr.mxu1 %v520_v0 }
  0x48   :  { %342 = vmatpush3.msra.mxu0 %v82_v10  ;;  %373 = vmatpush3.msra.mxu1 %v184_v25 }
  0x49   :  { %343 = vmatprep.subr.mxu0 %v520_v0  ;;  %374 = vmatprep.subr.mxu1 %v520_v0 }
  0x4a   :  { %344 = vmatpush3.msra.mxu0 %v81_v11  ;;  %375 = vmatpush3.msra.mxu1 %v183_v26 }
  0x4b   :  { %345 = vmatprep.subr.mxu0 %v520_v0  ;;  %376 = vmatprep.subr.mxu1 %v520_v0 }
  0x4c   :  { %346 = vmatpush3.msra.mxu0 %v80_v12  ;;  %377 = vmatpush3.msra.mxu1 %v182_v27 }
  0x4d   :  { %347 = vmatprep.subr.mxu0 %v520_v0  ;;  %378 = vmatprep.subr.mxu1 %v520_v0 }
  0x4e   :  { %348 = vmatpush3.msra.mxu0 %v79_v13  ;;  %379 = vmatpush3.msra.mxu1 %v181_v28 }
  0x4f   :  { %349 = vmatprep.subr.mxu0 %v520_v0  ;;  %380 = vmatprep.subr.mxu1 %v520_v0 }
  0x50   :  { %350 = vmatpush3.msra.mxu0 %v78_v14  ;;  %381 = vmatpush3.msra.mxu1 %v180_v29 }
  0x51   :  { %351 = vmatprep.subr.mxu0 %v520_v0  ;;  %382 = vmatprep.subr.mxu1 %v520_v0 }
  0x52   :  { %352 = vmatpush3.msra.mxu0 %v77_v15  ;;  %383 = vmatpush3.msra.mxu1 %v179_v30 }
  0x53   :  { %353 = vmatprep.subr.mxu0 %v520_v0  ;;  %384 = vmatprep.subr.mxu1 %v520_v0 }
  0x54   :  { %354 = vmatpush3.msra.mxu0 %v76_v16  ;;  %385 = vmatpush3.msra.mxu1 %v178_v31 }
  0x55   :  { %356 = vmatmul.mubr.f32.vlgmr.msra.gmra.mxu0 %v75_v17  ;;  %386 = vmatprep.subr.mxu1 %v520_v0 }
  0x56   :  { %387 = vmatpush3.msra.mxu1 %v177_v32 }
  0x57   :  { %388 = vmatprep.subr.mxu1 %v520_v0 }
  0x58   :  { %389 = vmatpush3.msra.mxu1 %v176_v33 }
 0x115   :  { %v165_v35 = vpop.f32.mrf.mxu0 }
 0x116   :  { %v166_v36 = vadd.f32 %v287_v34, %v165_v35 }
 0x117   :  { %v357_v37 = vpop.f32.mrf.mxu0 }
 0x118   :  { %v169_v38 = vsub.f32 0.0, %v166_v36 }
 0x11a   :  { %v170_v39 = vmul.f32 1.442695, %v169_v38 }
 0x11c   :  { %402 = vpow2.f32 %v170_v39 }
 0x129   :  { %v403_v40 = vpop.eup %402 }
 0x12a   :  { %v172_v41 = vadd.f32 1.0, %v403_v40 }
 0x12c   :  { %404 = vrcp.f32 %v172_v41 }
 0x139   :  { %v405_v43 = vpop.eup %404 }
 0x13a   :  { %v175_v44 = vmul.f32 %v405_v43, %v174_v42 }
 0x13c   :  { %391 = vmatmul.mubr.f32.vlgmr.msra.gmra.mxu1 %v175_v44 }
 0x1fc   :  { %v265_v46 = vpop.f32.mrf.mxu1 }
 0x1fd   :  { %v266_v47 = vadd.f32 %v288_v45, %v265_v46 }
 0x1fe   :  { %v392_v48 = vpop.f32.mrf.mxu1 }
 0x1ff   :  { %269 = vst [vmem:[#allocation10] sm:$0xff] %v266_v47 }
 0x200   :  { %497 = shalt.err (!%p494_p10)
}
 0x201   :  { %279 = dma.vmem_to_hbm [thread:$0]  %s277_s20, 128, %s619_s6, [#allocation4]  }
 0x202   :  { %512 = dma.done.wait [#allocation4], 128  }
 0x203   :  { %513 = vsyncadd [#allocation4], 4294967168 }
 0x204   :  { %283 = vsyncpa [#allocation3], 1 }
 0x205   :  { %284 = vsyncpa [#allocation6], 1 }
 0x206   :  { %285 = vsyncpa [#allocation9], 1 }
 0x207   :  { %286 = vsyncpa [#allocation4], 1 }

</bundles_post_ra>
